<compile_context>
chip_gen: v5e
topology: v5e:2x2
jax: 0.10.0
libtpu: 0.0.40
codegen_flags: <defaults>
</compile_context>

<pallas_src>
import functools

import jax
import jax.numpy as jnp
from jax.experimental import pallas as pl
from jax.experimental.pallas import tpu as pltpu

LANES = 128  # channel axes of the in-kernel compute are padded to this width


# ---------------------------------------------------------------------------
# Pallas kernel: fused (conv1 3x3/s2 + bias + ReLU) -> (conv2 3x3/s2 + bias + ReLU)
# One grid step == one image.
# ---------------------------------------------------------------------------

def _fused_backbone_kernel(p_ref, w1_ref, b1_ref, w2_ref, b2_ref,
                           f1_ref, f2_ref, *, oh2, ow2):
    m2 = oh2 * ow2
    c1 = f1_ref.shape[-1]
    c2 = f2_ref.shape[-1]
    lanes = w1_ref.shape[-1]

    # ---- Stage 1: conv1 (+ folded Normalize) + bias + ReLU: one bf16 MXU matmul.
    patches = p_ref[0]                                           # [M1pb, Kp] bf16
    f1 = jnp.dot(patches, w1_ref[...], preferred_element_type=jnp.float32)
    f1 = jnp.maximum(f1 + b1_ref[...], 0.0)                      # [M1pb, 128] f32
    f1_ref[0] = f1[:, :c1]                                       # layer1: real channels only

    # ---- Stage 2: stride-2 3x3 tap gather straight from the VMEM-resident f1.
    # f1 rows are parity-ordered: row = (2*(oh1%2)+(ow1%2))*m2 + (oh1//2)*ow2 + ow1//2,
    # so every tap is a contiguous parity block with a static row shift; the rows
    # whose tap falls outside the feature map are zeroed with an iota mask (this is
    # conv2's zero padding).  No sel matmul, no strided loads.
    idx = jax.lax.broadcasted_iota(jnp.int32, (m2, 1), 0)
    col_ok = (idx % ow2) != 0        # invalid when the tap column is left of the map
    row_ok = idx >= ow2              # invalid when the tap row is above the map

    taps = []
    for kh in range(3):
        for kw in range(3):
            r = 0 if kh == 1 else 1
            s = 0 if kw == 1 else 1
            shift = (ow2 if kh == 0 else 0) + (1 if kw == 0 else 0)
            start = (2 * r + s) * m2 - shift
            if start >= 0:
                blk = f1[start:start + m2, :]                     # static slice
            else:  # only possible for degenerate oh2 == 1 maps
                blk = jnp.concatenate(
                    [jnp.zeros((shift, lanes), f1.dtype), f1[:m2 - shift, :]], axis=0)
            if shift:
                mask = None
                if kh == 0:
                    mask = row_ok
                if kw == 0:
                    mask = col_ok if mask is None else jnp.logical_and(mask, col_ok)
                blk = jnp.where(mask, blk, 0.0)
            taps.append(blk.astype(jnp.bfloat16))

    # Fuse the 9 taps into a single K = 9*128 matmul (w2 is packed tap-major).
    g = jnp.concatenate(taps, axis=1)                             # [m2, 9*128] bf16
    f2 = jnp.dot(g, w2_ref[...], preferred_element_type=jnp.float32)
    f2 = jnp.maximum(f2 + b2_ref[...], 0.0)
    f2_ref[0] = f2[:, :c2]                                        # layer2: real channels only


def fused_backbone_pallas(patches, w1p, b1p, w2p, b2p, *, oh2, ow2, c1, c2):
    """patches: [B, M1pb, Kp] bf16 (parity-ordered rows); w1p: [Kp, 128] bf16;
    b1p: [1, 128] f32; w2p: [9*128, 128] bf16 (tap-major); b2p: [1, 128] f32.
    Returns (layer1 slab [B, M1pb, c1], layer2 slab [B, M2pb, c2]), both f32."""
    B, m1pb, kp = patches.shape
    m2pb = oh2 * ow2
    lanes = w1p.shape[1]

    kernel = functools.partial(_fused_backbone_kernel, oh2=oh2, ow2=ow2)

    flops = 2 * B * (m1pb * kp * lanes + m2pb * w2p.shape[0] * lanes)
    bytes_accessed = (patches.size * 2 + w1p.size * 2 + w2p.size * 2
                      + b1p.size * 4 + b2p.size * 4
                      + B * m1pb * c1 * 4 + B * m2pb * c2 * 4)

    # TODO(synk): at large resolutions additionally tile oh2 into row bands (with a
    # one-row halo on f1) so the per-image working set fits v7x's 64 MiB VMEM.
    return pl.pallas_call(
        kernel,
        out_shape=(jax.ShapeDtypeStruct((B, m1pb, c1), jnp.float32),
                   jax.ShapeDtypeStruct((B, m2pb, c2), jnp.float32)),
        grid=(B,),
        in_specs=[
            pl.BlockSpec((1, m1pb, kp), lambda b: (b, 0, 0)),
            pl.BlockSpec(w1p.shape, lambda b: (0, 0)),     # weights stay VMEM-resident
            pl.BlockSpec(b1p.shape, lambda b: (0, 0)),
            pl.BlockSpec(w2p.shape, lambda b: (0, 0)),
            pl.BlockSpec(b2p.shape, lambda b: (0, 0)),
        ],
        out_specs=(pl.BlockSpec((1, m1pb, c1), lambda b: (b, 0, 0)),
                   pl.BlockSpec((1, m2pb, c2), lambda b: (b, 0, 0))),
        compiler_params=pltpu.CompilerParams(
            dimension_semantics=("parallel",),           # image axis -> both TCs on v7x
            vmem_limit_bytes=32 * 1024 * 1024),          # ample; valid on v5e/v6e/v7x
        cost_estimate=pl.CostEstimate(flops=flops, transcendentals=0,
                                      bytes_accessed=bytes_accessed),
    )(patches, w1p, b1p, w2p, b2p)


# ---------------------------------------------------------------------------
# Parameter preparation (one-time, at init)
# ---------------------------------------------------------------------------

# timm default_cfg-style per-channel normalization constants (ImageNet).
_MEAN = jnp.array([0.485, 0.456, 0.406], dtype=jnp.float32)
_STD = jnp.array([0.229, 0.224, 0.225], dtype=jnp.float32)


def init_params(key):
    k1, k2, k3, k4 = jax.random.split(key, 4)
    return {
        "conv1_w": jax.random.normal(k1, (8, 3, 3, 3), jnp.float32) * 0.1,
        "conv1_b": jax.random.normal(k2, (8,), jnp.float32) * 0.01,
        "conv2_w": jax.random.normal(k3, (16, 8, 3, 3), jnp.float32) * 0.1,
        "conv2_b": jax.random.normal(k4, (16,), jnp.float32) * 0.01,
    }


def prepare_params(params, mean, std):
    """Fold Normalize into conv1, reorder weights to matmul layout, pad, cast the
    MXU-side operands to bf16, and pack conv2 weights tap-major for the fused
    K=9*128 matmul.  No batch/size dependence (the sel gather matrix is gone)."""
    w1, b1 = params["conv1_w"], params["conv1_b"]      # [C1, Cin, 3, 3], [C1]
    w2, b2 = params["conv2_w"], params["conv2_b"]      # [C2, C1, 3, 3], [C2]
    c1, cin, kh_, kw_ = w1.shape
    c2 = w2.shape[0]
    k1 = kh_ * kw_ * cin
    kpad = ((k1 + 7) // 8) * 8                         # 27 -> 32, NOT 128
    assert c1 <= LANES and c2 <= LANES and k1 <= LANES

    # conv1(normalize(x)) == conv1'(x) with w' = w / std (per input channel) and
    # b' = b - sum(w * mean / std), provided the spatial border is padded with
    # `mean` (which is exactly 0 in normalized space).
    inv_std = 1.0 / std
    w1f = w1 * inv_std[None, :, None, None]
    b1f = b1 - jnp.sum(w1 * (mean * inv_std)[None, :, None, None], axis=(1, 2, 3))

    w1_mat = jnp.transpose(w1f, (2, 3, 1, 0)).reshape(k1, c1)          # [(kh,kw,cin), c1]
    w1_pad = jnp.zeros((kpad, LANES), jnp.float32).at[:k1, :c1].set(w1_mat)
    b1_pad = jnp.zeros((1, LANES), jnp.float32).at[0, :c1].set(b1f)

    w2_mat = jnp.transpose(w2, (2, 3, 1, 0)).reshape(kh_ * kw_, c1, c2)  # [9, C1, C2]
    w2_pad = jnp.zeros((kh_ * kw_, LANES, LANES), jnp.float32).at[:, :c1, :c2].set(w2_mat)
    w2_big = w2_pad.reshape(kh_ * kw_ * LANES, LANES)                    # tap-major rows
    b2_pad = jnp.zeros((1, LANES), jnp.float32).at[0, :c2].set(b2)

    return {
        "mean": mean,
        "w1": w1_pad.astype(jnp.bfloat16), "b1": b1_pad,
        "w2": w2_big.astype(jnp.bfloat16), "b2": b2_pad,
    }


# ---------------------------------------------------------------------------
# Synthetic TimmModel forward
# ---------------------------------------------------------------------------

@functools.partial(jax.jit, static_argnames=("c1", "c2"))
def timm_model_forward(x_nchw, prep, *, c1, c2):
    """Mirrors TimmModel.forward: preprocess (folded into conv1) -> backbone ->
    hooked features -> _post_process (feature NCHW + all-False bool mask)."""
    B, C, H, W = x_nchw.shape
    assert H % 4 == 0 and W % 4 == 0, "two stride-2 stages need H, W divisible by 4"
    oh1, ow1 = H // 2, W // 2
    oh2, ow2 = oh1 // 2, ow1 // 2
    kpad = prep["w1"].shape[0]

    x = jnp.transpose(x_nchw, (0, 2, 3, 1)).astype(jnp.float32)         # NHWC

    # Border padded with `mean` so the folded conv1 reproduces zero padding in
    # normalized space exactly (no separate normalize kernel / HBM round trip).
    xp = jnp.broadcast_to(prep["mean"].reshape(1, 1, 1, C), (B, H + 2, W + 2, C))
    xp = xp.at[:, 1:H + 1, 1:W + 1, :].set(x)

    # conv1 im2col (9 strided views of a tiny tensor), rows reordered to parity
    # order (row = (2*(oh1%2)+(ow1%2))*oh2*ow2 + (oh1//2)*ow2 + ow1//2) so the
    # in-kernel conv2 gather is contiguous; K padded 27->32 and cast to bf16.
    cols = [xp[:, kh:kh + 2 * oh1:2, kw:kw + 2 * ow1:2, :]
            for kh in range(3) for kw in range(3)]
    patches = jnp.stack(cols, axis=3).reshape(B, oh1, ow1, 9 * C)
    patches = patches.reshape(B, oh2, 2, ow2, 2, 9 * C).transpose(0, 2, 4, 1, 3, 5)
    patches = patches.reshape(B, oh1 * ow1, 9 * C)
    patches = jnp.pad(patches, ((0, 0), (0, 0), (0, kpad - 9 * C))).astype(jnp.bfloat16)

    f1_slab, f2_slab = fused_backbone_pallas(
        patches, prep["w1"], prep["b1"], prep["w2"], prep["b2"],
        oh2=oh2, ow2=ow2, c1=c1, c2=c2)

    # Undo the parity ordering of layer1 (cheap wrapper-side layout plumbing).
    f1 = (f1_slab.reshape(B, 2, 2, oh2, ow2, c1)
          .transpose(0, 3, 1, 4, 2, 5).reshape(B, oh1, ow1, c1))
    f2 = f2_slab.reshape(B, oh2, ow2, c2)
    features = {"layer1": f1, "layer2": f2}

    # _post_process: NestedTensor(feature_nchw, zero bool mask [B, H, W])
    out = {}
    for name, feat in features.items():
        feat_nchw = jnp.transpose(feat, (0, 3, 1, 2))
        mask = jnp.zeros((feat_nchw.shape[0], feat_nchw.shape[2], feat_nchw.shape[3]),
                         dtype=jnp.bool_)
        out[name] = (feat_nchw, mask)
    return out


# ---------------------------------------------------------------------------
# Pure-JAX reference (f32) for correctness verification
# ---------------------------------------------------------------------------

def _reference_forward(x_nchw, params, mean, std):
    x = (x_nchw - mean[None, :, None, None]) / std[None, :, None, None]
    f1 = jax.lax.conv_general_dilated(
        x, params["conv1_w"], window_strides=(2, 2), padding=((1, 1), (1, 1)),
        dimension_numbers=("NCHW", "OIHW", "NCHW"))
    f1 = jnp.maximum(f1 + params["conv1_b"][None, :, None, None], 0.0)
    f2 = jax.lax.conv_general_dilated(
        f1, params["conv2_w"], window_strides=(2, 2), padding=((1, 1), (1, 1)),
        dimension_numbers=("NCHW", "OIHW", "NCHW"))
    f2 = jnp.maximum(f2 + params["conv2_b"][None, :, None, None], 0.0)
    return f1, f2


if __name__ == "__main__":
    key = jax.random.PRNGKey(0)
    kx, kp = jax.random.split(key)
    # batched images [B, 3, H, W] per the reference docstring
    x = jax.random.uniform(kx, (2, 3, 16, 16), dtype=jnp.float32)
    params = init_params(kp)
    prep = prepare_params(params, _MEAN, _STD)

    out = timm_model_forward(x, prep, c1=8, c2=16)
    for name, (feat, mask) in out.items():
        jax.block_until_ready(feat)
        jax.block_until_ready(mask)
        assert mask.dtype == jnp.bool_
        assert feat.shape[0] == 2

    assert out["layer1"][0].shape == (2, 8, 8, 8)
    assert out["layer2"][0].shape == (2, 16, 4, 4)

    # Numerical check vs. a pure-JAX f32 reference (tolerance accounts for the
    # bf16 MXU operands; accumulation is f32).
    f1_ref, f2_ref = _reference_forward(x, params, _MEAN, _STD)
    assert float(jnp.max(jnp.abs(out["layer1"][0] - f1_ref))) < 1e-1
    assert float(jnp.max(jnp.abs(out["layer2"][0] - f2_ref))) < 1e-1

    print("KERNEL_OK")
</pallas_src>

<mosaic_0001>
module attributes {stable_mosaic.version = 11 : i64} {
  func.func @_fused_backbone_kernel(%arg0: i32, %arg1: memref<1x64x32xbf16, #tpu.memory_space<vmem>>, %arg2: memref<32x128xbf16, #tpu.memory_space<vmem>>, %arg3: memref<1x128xf32, #tpu.memory_space<vmem>>, %arg4: memref<1152x128xbf16, #tpu.memory_space<vmem>>, %arg5: memref<1x128xf32, #tpu.memory_space<vmem>>, %arg6: memref<1x64x8xf32, #tpu.memory_space<vmem>>, %arg7: memref<1x16x16xf32, #tpu.memory_space<vmem>>) attributes {dimension_semantics = [#tpu.dimension_semantics<parallel>], iteration_bounds = array<i64: 2>, scalar_prefetch = 0 : i64, scratch_operands = 0 : i64, tpu.core_type = #tpu.core_type<tc>, window_params = [{transform_indices = @transform_0, window_bounds = array<i64: 1, 64, 32>}, {pipeline_mode = #tpu.pipeline_mode<synchronous>, transform_indices = @transform_1, window_bounds = array<i64: 32, 128>}, {pipeline_mode = #tpu.pipeline_mode<synchronous>, transform_indices = @transform_2, window_bounds = array<i64: 1, 128>}, {pipeline_mode = #tpu.pipeline_mode<synchronous>, transform_indices = @transform_3, window_bounds = array<i64: 1152, 128>}, {pipeline_mode = #tpu.pipeline_mode<synchronous>, transform_indices = @transform_4, window_bounds = array<i64: 1, 128>}, {transform_indices = @transform_5, window_bounds = array<i64: 1, 64, 8>}, {transform_indices = @transform_6, window_bounds = array<i64: 1, 16, 16>}]} {
    %c0 = arith.constant 0 : index
    %c0_0 = arith.constant 0 : index
    %c0_1 = arith.constant 0 : index
    %0 = vector.load %arg1[%c0, %c0_0, %c0_1] : memref<1x64x32xbf16, #tpu.memory_space<vmem>>, vector<1x64x32xbf16>
    %1 = vector.shape_cast %0 : vector<1x64x32xbf16> to vector<64x32xbf16>
    %c0_2 = arith.constant 0 : index
    %c0_3 = arith.constant 0 : index
    %2 = vector.load %arg2[%c0_2, %c0_3] : memref<32x128xbf16, #tpu.memory_space<vmem>>, vector<32x128xbf16>
    %cst = arith.constant dense<0.000000e+00> : vector<64x128xf32>
    %3 = tpu.matmul %1, %2, %cst {dimension_numbers = #tpu.dot_dimension_numbers<[1], [0], [0], [1], [0, 0, 1, 1], [], []>} : vector<64x32xbf16>, vector<32x128xbf16>, vector<64x128xf32> -> vector<64x128xf32>
    %c0_4 = arith.constant 0 : index
    %c0_5 = arith.constant 0 : index
    %4 = vector.load %arg3[%c0_4, %c0_5] : memref<1x128xf32, #tpu.memory_space<vmem>>, vector<1x128xf32>
    %5 = vector.broadcast %4 : vector<1x128xf32> to vector<64x128xf32>
    %6 = arith.addf %3, %5 : vector<64x128xf32>
    %cst_6 = arith.constant 0.000000e+00 : f32
    %7 = vector.broadcast %cst_6 : f32 to vector<64x128xf32>
    %8 = arith.maximumf %6, %7 : vector<64x128xf32>
    %9 = vector.extract_strided_slice %8 {offsets = [0, 0], sizes = [64, 8], strides = [1, 1]} : vector<64x128xf32> to vector<64x8xf32>
    %c0_7 = arith.constant 0 : index
    %c0_8 = arith.constant 0 : index
    %c0_9 = arith.constant 0 : index
    %10 = vector.load %arg6[%c0_7, %c0_8, %c0_9] : memref<1x64x8xf32, #tpu.memory_space<vmem>>, vector<1x64x8xf32>
    %11 = vector.shape_cast %10 : vector<1x64x8xf32> to vector<64x8xf32>
    %12 = vector.shape_cast %9 : vector<64x8xf32> to vector<1x64x8xf32>
    tpu.vector_store %arg6[%c0_7, %c0_8, %c0_9], %12 {strides = array<i32>} : memref<1x64x8xf32, #tpu.memory_space<vmem>>, vector<1x64x8xf32>,
    %13 = tpu.iota {dimensions = array<i32: 0>} : vector<16x1xi32>
    %c4_i32 = arith.constant 4 : i32
    %c0_i32 = arith.constant 0 : i32
    %14 = arith.cmpi eq, %c4_i32, %c0_i32 : i32
    %c1_i32 = arith.constant 1 : i32
    %15 = arith.select %14, %c1_i32, %c4_i32 : i32
    %16 = vector.broadcast %15 : i32 to vector<16x1xi32>
    %17 = arith.remsi %13, %16 : vector<16x1xi32>
    %c0_i32_10 = arith.constant 0 : i32
    %18 = vector.broadcast %c0_i32_10 : i32 to vector<16x1xi32>
    %19 = arith.cmpi ne, %17, %18 : vector<16x1xi32>
    %c0_i32_11 = arith.constant 0 : i32
    %20 = vector.broadcast %c0_i32_11 : i32 to vector<16x1xi32>
    %21 = arith.cmpi slt, %17, %20 : vector<16x1xi32>
    %c0_i32_12 = arith.constant 0 : i32
    %22 = arith.cmpi slt, %15, %c0_i32_12 : i32
    %23 = vector.broadcast %22 : i1 to vector<16x1xi1>
    %24 = vector.broadcast %23 : vector<16x1xi1> to vector<16x1xi1>
    %25 = arith.xori %21, %24 : vector<16x1xi1>
    %26 = arith.andi %25, %19 : vector<16x1xi1>
    %27 = vector.broadcast %15 : i32 to vector<16x1xi32>
    %28 = arith.addi %17, %27 : vector<16x1xi32>
    %29 = arith.select %26, %28, %17 : vector<16x1xi1>, vector<16x1xi32>
    %c0_i32_13 = arith.constant 0 : i32
    %30 = vector.broadcast %c0_i32_13 : i32 to vector<16x1xi32>
    %31 = arith.cmpi ne, %29, %30 : vector<16x1xi32>
    %c4_i32_14 = arith.constant 4 : i32
    %32 = vector.broadcast %c4_i32_14 : i32 to vector<16x1xi32>
    %33 = arith.cmpi sge, %13, %32 : vector<16x1xi32>
    %34 = vector.extract_strided_slice %8 {offsets = [43, 0], sizes = [16, 128], strides = [1, 1]} : vector<64x128xf32> to vector<16x128xf32>
    %35 = arith.andi %33, %31 : vector<16x1xi1>
    %cst_15 = arith.constant 0.000000e+00 : f32
    %36 = vector.shape_cast %35 : vector<16x1xi1> to vector<16x1xi1>
    %37 = vector.broadcast %36 : vector<16x1xi1> to vector<16x128xi1>
    %38 = vector.broadcast %cst_15 : f32 to vector<16x128xf32>
    %39 = arith.select %37, %34, %38 : vector<16x128xi1>, vector<16x128xf32>
    %40 = arith.truncf %39 : vector<16x128xf32> to vector<16x128xbf16>
    %41 = vector.extract_strided_slice %8 {offsets = [28, 0], sizes = [16, 128], strides = [1, 1]} : vector<64x128xf32> to vector<16x128xf32>
    %cst_16 = arith.constant 0.000000e+00 : f32
    %42 = vector.shape_cast %33 : vector<16x1xi1> to vector<16x1xi1>
    %43 = vector.broadcast %42 : vector<16x1xi1> to vector<16x128xi1>
    %44 = vector.broadcast %cst_16 : f32 to vector<16x128xf32>
    %45 = arith.select %43, %41, %44 : vector<16x128xi1>, vector<16x128xf32>
    %46 = arith.truncf %45 : vector<16x128xf32> to vector<16x128xbf16>
    %47 = vector.extract_strided_slice %8 {offsets = [44, 0], sizes = [16, 128], strides = [1, 1]} : vector<64x128xf32> to vector<16x128xf32>
    %cst_17 = arith.constant 0.000000e+00 : f32
    %48 = vector.shape_cast %33 : vector<16x1xi1> to vector<16x1xi1>
    %49 = vector.broadcast %48 : vector<16x1xi1> to vector<16x128xi1>
    %50 = vector.broadcast %cst_17 : f32 to vector<16x128xf32>
    %51 = arith.select %49, %47, %50 : vector<16x128xi1>, vector<16x128xf32>
    %52 = arith.truncf %51 : vector<16x128xf32> to vector<16x128xbf16>
    %53 = vector.extract_strided_slice %8 {offsets = [15, 0], sizes = [16, 128], strides = [1, 1]} : vector<64x128xf32> to vector<16x128xf32>
    %cst_18 = arith.constant 0.000000e+00 : f32
    %54 = vector.shape_cast %31 : vector<16x1xi1> to vector<16x1xi1>
    %55 = vector.broadcast %54 : vector<16x1xi1> to vector<16x128xi1>
    %56 = vector.broadcast %cst_18 : f32 to vector<16x128xf32>
    %57 = arith.select %55, %53, %56 : vector<16x128xi1>, vector<16x128xf32>
    %58 = arith.truncf %57 : vector<16x128xf32> to vector<16x128xbf16>
    %59 = vector.extract_strided_slice %8 {offsets = [0, 0], sizes = [16, 128], strides = [1, 1]} : vector<64x128xf32> to vector<16x128xf32>
    %60 = arith.truncf %59 : vector<16x128xf32> to vector<16x128xbf16>
    %61 = vector.extract_strided_slice %8 {offsets = [16, 0], sizes = [16, 128], strides = [1, 1]} : vector<64x128xf32> to vector<16x128xf32>
    %62 = arith.truncf %61 : vector<16x128xf32> to vector<16x128xbf16>
    %63 = vector.extract_strided_slice %8 {offsets = [47, 0], sizes = [16, 128], strides = [1, 1]} : vector<64x128xf32> to vector<16x128xf32>
    %cst_19 = arith.constant 0.000000e+00 : f32
    %64 = vector.shape_cast %31 : vector<16x1xi1> to vector<16x1xi1>
    %65 = vector.broadcast %64 : vector<16x1xi1> to vector<16x128xi1>
    %66 = vector.broadcast %cst_19 : f32 to vector<16x128xf32>
    %67 = arith.select %65, %63, %66 : vector<16x128xi1>, vector<16x128xf32>
    %68 = arith.truncf %67 : vector<16x128xf32> to vector<16x128xbf16>
    %69 = vector.extract_strided_slice %8 {offsets = [32, 0], sizes = [16, 128], strides = [1, 1]} : vector<64x128xf32> to vector<16x128xf32>
    %70 = arith.truncf %69 : vector<16x128xf32> to vector<16x128xbf16>
    %71 = vector.extract_strided_slice %8 {offsets = [48, 0], sizes = [16, 128], strides = [1, 1]} : vector<64x128xf32> to vector<16x128xf32>
    %72 = arith.truncf %71 : vector<16x128xf32> to vector<16x128xbf16>
    %73 = tpu.concatenate %40, %46, %52, %58, %60, %62, %68, %70, %72 in 1 : vector<16x128xbf16>, vector<16x128xbf16>, vector<16x128xbf16>, vector<16x128xbf16>, vector<16x128xbf16>, vector<16x128xbf16>, vector<16x128xbf16>, vector<16x128xbf16>, vector<16x128xbf16> -> vector<16x1152xbf16>
    %c0_20 = arith.constant 0 : index
    %c0_21 = arith.constant 0 : index
    %74 = vector.load %arg4[%c0_20, %c0_21] : memref<1152x128xbf16, #tpu.memory_space<vmem>>, vector<1152x128xbf16>
    %cst_22 = arith.constant dense<0.000000e+00> : vector<16x128xf32>
    %75 = tpu.matmul %73, %74, %cst_22 {dimension_numbers = #tpu.dot_dimension_numbers<[1], [0], [0], [1], [0, 0, 1, 1], [], []>} : vector<16x1152xbf16>, vector<1152x128xbf16>, vector<16x128xf32> -> vector<16x128xf32>
    %c0_23 = arith.constant 0 : index
    %c0_24 = arith.constant 0 : index
    %76 = vector.load %arg5[%c0_23, %c0_24] : memref<1x128xf32, #tpu.memory_space<vmem>>, vector<1x128xf32>
    %77 = vector.broadcast %76 : vector<1x128xf32> to vector<16x128xf32>
    %78 = arith.addf %75, %77 : vector<16x128xf32>
    %cst_25 = arith.constant 0.000000e+00 : f32
    %79 = vector.broadcast %cst_25 : f32 to vector<16x128xf32>
    %80 = arith.maximumf %78, %79 : vector<16x128xf32>
    %81 = vector.extract_strided_slice %80 {offsets = [0, 0], sizes = [16, 16], strides = [1, 1]} : vector<16x128xf32> to vector<16x16xf32>
    %c0_26 = arith.constant 0 : index
    %c0_27 = arith.constant 0 : index
    %c0_28 = arith.constant 0 : index
    %82 = vector.load %arg7[%c0_26, %c0_27, %c0_28] : memref<1x16x16xf32, #tpu.memory_space<vmem>>, vector<1x16x16xf32>
    %83 = vector.shape_cast %82 : vector<1x16x16xf32> to vector<16x16xf32>
    %84 = vector.shape_cast %81 : vector<16x16xf32> to vector<1x16x16xf32>
    tpu.vector_store %arg7[%c0_26, %c0_27, %c0_28], %84 {strides = array<i32>} : memref<1x16x16xf32, #tpu.memory_space<vmem>>, vector<1x16x16xf32>,
    return
  }
  func.func @transform_0(%arg0: i32) -> (i32, i32, i32) {
    %c0_i32 = arith.constant 0 : i32
    %c0_i32_0 = arith.constant 0 : i32
    %c0_i32_1 = arith.constant 0 : i32
    return %arg0, %c0_i32, %c0_i32_0 : i32, i32, i32
  }
  func.func @transform_1(%arg0: i32) -> (i32, i32) {
    %c0_i32 = arith.constant 0 : i32
    %c0_i32_0 = arith.constant 0 : i32
    %c0_i32_1 = arith.constant 0 : i32
    return %c0_i32, %c0_i32_0 : i32, i32
  }
  func.func @transform_2(%arg0: i32) -> (i32, i32) {
    %c0_i32 = arith.constant 0 : i32
    %c0_i32_0 = arith.constant 0 : i32
    %c0_i32_1 = arith.constant 0 : i32
    return %c0_i32, %c0_i32_0 : i32, i32
  }
  func.func @transform_3(%arg0: i32) -> (i32, i32) {
    %c0_i32 = arith.constant 0 : i32
    %c0_i32_0 = arith.constant 0 : i32
    %c0_i32_1 = arith.constant 0 : i32
    return %c0_i32, %c0_i32_0 : i32, i32
  }
  func.func @transform_4(%arg0: i32) -> (i32, i32) {
    %c0_i32 = arith.constant 0 : i32
    %c0_i32_0 = arith.constant 0 : i32
    %c0_i32_1 = arith.constant 0 : i32
    return %c0_i32, %c0_i32_0 : i32, i32
  }
  func.func @transform_5(%arg0: i32) -> (i32, i32, i32) {
    %c0_i32 = arith.constant 0 : i32
    %c0_i32_0 = arith.constant 0 : i32
    %c0_i32_1 = arith.constant 0 : i32
    return %arg0, %c0_i32, %c0_i32_0 : i32, i32, i32
  }
  func.func @transform_6(%arg0: i32) -> (i32, i32, i32) {
    %c0_i32 = arith.constant 0 : i32
    %c0_i32_0 = arith.constant 0 : i32
    %c0_i32_1 = arith.constant 0 : i32
    return %arg0, %c0_i32, %c0_i32_0 : i32, i32, i32
  }
}

</mosaic_0001>

<bundles_post_ra>
// kernel: timm_model_forward.1
= control target key start
LH: loop header
LB: loop body
LE: loop exit
PB: predicated region body
PF: predicated region fallthrough
CT: control target
= control target key end

     0   :  { %12 = vsyncpa [#allocation3], 0  ;;  %s2356_s0 = inlined_call_operand.vmem [shape: bf16[2,64,32], index: 0, kind: input, shape index: {}]   ;;  %s2357_s1 = inlined_call_operand.vmem [shape: bf16[32,128], index: 1, kind: input, shape index: {}]   ;;  %s2358_s2 = inlined_call_operand.vmem [shape: f32[1,128], index: 2, kind: input, shape index: {}]   ;;  %s2359_s3 = inlined_call_operand.vmem [shape: bf16[1152,128], index: 3, kind: input, shape index: {}]   ;;  %s2360_s4 = inlined_call_operand.vmem [shape: f32[1,128], index: 4, kind: input, shape index: {}]   ;;  %s2361_s5 = inlined_call_operand.vmem [shape: f32[2,64,8], index: 5, kind: output, shape index: {0}]   ;;  %s2362_s6 = inlined_call_operand.hbm [shape: f32[2,16,16], index: 6, kind: output, shape index: {1}]  }
   0x1   :  { %14 = vsyncpa [#allocation3 + $0x1], 0  ;;  %s1919_s21 = smov 0   ;;  %s1921_s22 = smov 0  }
   0x2   :  { %s1923_s23 = smov 0   ;;  %s1925_s24 = smov 0  }
   0x3 LB: > { %s1940_s25 = sadd.s32 4294967295, %s1880_s24   ;;  %s1364_s26 = sadd.s32 4294967294, %s1880_s24   ;;  %s1880_s24 = sphi %s1925_s24, %s2372_s24   ;;  %s1876_s23 = sphi %s1923_s23, %s2371_s23   ;;  %s1872_s22 = sphi %s1921_s22, %s2370_s22   ;;  %s1868_s21 = sphi %s1919_s21, %s2369_s21  }
   0x4   : > { %s1944_s27 = sadd.s32 1, %s1880_s24   ;;  %s163_s28 = sadd.s32 1, %s1876_s23 }
   0x5   : > { %s160_s29 = ssub.s32 %s1880_s24, %s1944_s27  ;;  %p173_p0 = scmp.ne.s32.totalorder %s1876_s23, %s1872_s22 }
   0x6   : > { %p161_p1 = scmp.eq.s32.totalorder %s160_s29, 0  ;;  %p174_p2 = scmp.eq.s32.totalorder %s1940_s25, 1 }
   0x7   : > { %p179_p3 = scmp.ne.s32.totalorder %s1872_s22, %s1868_s21  ;;  %p180_p4 = scmp.eq.s32.totalorder %s1364_s26, 1 }
   0x8   : > { %s1955_s30 = scalar_select %p161_p1, %s1876_s23, %s163_s28  }
   0x9   : > { %p1957_p5 = por %p174_p2, %p173_p0  ;;  %p1961_p6 = por %p180_p4, %p179_p3 }
   0xa   : > { %p1367_p7 = scmp.ge.s32.totalorder %s1880_s24, 1  ;;  %p218_p8 = scmp.lt.s32.totalorder %s1880_s24, 3 }
   0xc   : > { %p219_p9 = pnand %p1367_p7, %p218_p8 }
   0xd   : > { %p253_p10 = scmp.lt.s32.totalorder (!%p219_p9), %s1940_s25, 1  ;;  %s1774_s15 = sshll.u32 (!%p219_p9), %s1940_s25, 4 }
   0xe   : > { %222 = sbr.rel (%p219_p9) target bundleno = 399 (0x18f), region = 40  ;;  %s1838_s10 = scalar_lea.hbm (!%p219_p9), %s2362_s6, 32 }
  0x13   : > { %v1701_v0 = vld [vmem:[%s2357_s1 + $0x8] sm:$0xff]  ;;  %v1700_v1 = vld [vmem:[%s2357_s1] sm:$0xff]  ;;  %s1975_s13 = scalar_select %p253_p10, %s1940_s25, 1  ;;  %vm312_vm0 = vcmask 261120   ;;  %v1717_v4 = vld [vmem:[%s2359_s3 + $0x78] sm:$0xff]  ;;  %vm362_vm1 = vcmask 64512  }
  0x14   : > { %331 = vmatpush.bf16.msra.mxu0 %v1701_v0  ;;  %1136 = vmatpush.bf16.msra.mxu2 %v1717_v4  ;;  %v1716_v7 = vld [vmem:[%s2359_s3 + $0x70] sm:$0xff]  ;;  %v1715_v8 = vld [vmem:[%s2359_s3 + $0x68] sm:$0xff]  ;;  %v1714_v9 = vld [vmem:[%s2359_s3 + $0x60] sm:$0xff]  ;;  %vm429_vm2 = vcmask 1043456   ;;  %vm411_vm4 = vcmask 1044480   ;;  %vm457_vm7 = vcmask 1040384  }
  0x15   : > { %s1694_s14 = sshll.u32 %s1975_s13, 5  ;;  %v1713_v10 = vld [vmem:[%s2359_s3 + $0x58] sm:$0xff]  ;;  %v1712_v12 = vld [vmem:[%s2359_s3 + $0x50] sm:$0xff]  ;;  %v1711_v14 = vld [vmem:[%s2359_s3 + $0x48] sm:$0xff]  ;;  %s1695_s11 = sshll.u32 %s1975_s13, 6  ;;  %vm1250_vm9 = vcmask 130048  }
  0x16   : > { %s257_s17 = scalar_lea.vmem %s2356_s0, %s1694_s14  ;;  %v1709_v11 = vld [vmem:[%s2359_s3 + $0x38] sm:$0xff]  ;;  %v1708_v13 = vld [vmem:[%s2359_s3 + $0x30] sm:$0xff]  ;;  %v1707_v15 = vld [vmem:[%s2359_s3 + $0x28] sm:$0xff]  ;;  %s2051_s13 = scalar_lea.vmem %s2361_s5, %s1695_s11 }
  0x17   : > { %v1696_v2 = vld [vmem:[%s257_s17] sm:$0xff]  ;;  %v1697_v3 = vld [vmem:[%s257_s17 + $0x8] sm:$0xff]  ;;  %v1698_v5 = vld [vmem:[%s257_s17 + $0x10] sm:$0xff]  ;;  %1122 = vmatpush.bf16.msra.mxu1 %v1709_v11  ;;  %s250_s11 = sand.u32 1, %s1872_s22  }
  0x18   : > { %332 = vmatpush.bf16.msra.mxu0 %v1700_v1  ;;  %v1699_v6 = vld [vmem:[%s257_s17 + $0x18] sm:$0xff]  ;;  %1137 = vmatpush.bf16.msra.mxu2 %v1716_v7  ;;  %v1710_v16 = vld [vmem:[%s2359_s3 + $0x40] sm:$0xff]  ;;  %v1724_v21 = vld [vmem:[%s2359_s3 + $0xb0] sm:$0xff]  ;;  %v371_v7 = vlaneseq  ;;  %s1368_s14 = sshll.u32 %s250_s11, 4  ;;  %s1273_s17 = scalar_lea.hbm %s2362_s6, %s1774_s15 }
  0x19   : > { %v1706_v17 = vld [vmem:[%s2359_s3 + $0x20] sm:$0xff]  ;;  %v1725_v18 = vld [vmem:[%s2359_s3 + $0xb8] sm:$0xff]  ;;  %v1740_v22 = vld [vmem:[%s2359_s3 + $0x130] sm:$0xff]  ;;  %s252_s18 = scalar_lea.vmem [#allocation2], %s1368_s14  ;;  %s1276_s20 = sshll.u32 %s1273_s17, 4  ;;  %s1277_s20 = int_to_ptr.hbm [resolvable:$true] %s1276_s20 }
  0x1a   : > { %v1741_v19 = vld [vmem:[%s2359_s3 + $0x138] sm:$0xff]  ;;  %1150 = vmatpush.bf16.msra.mxu3 %v1725_v18  ;;  %v2035_v23 = vld [vmem:[%s2358_s2] ss:$0 sm:$0xff]  ;;  %v1704_v25 = vld [vmem:[%s2359_s3 + $0x10] sm:$0xff]  ;;  %s1274_s19 = sshll.u32 %s252_s18, 4  ;;  %s1259_s25 = scalar_lea.sflag [#allocation3], %s250_s11  ;;  %s1275_s19 = int_to_ptr.vmem [resolvable:$true] %s1274_s19 }
  0x1b   : > { %1397 = vmatmul.msk.bf16.vlgmr.msra.gmra.mxu0 %vm312_vm0, %v1696_v2  ;;  %1123 = vmatpush.bf16.msra.mxu1 %v1708_v13  ;;  %v1705_v20 = vld [vmem:[%s2359_s3 + $0x18] sm:$0xff]  ;;  %v1723_v26 = vld [vmem:[%s2359_s3 + $0xa8] sm:$0xff]  ;;  %v1722_v31 = vld [vmem:[%s2359_s3 + $0xa0] sm:$0xff]  ;;  %s1832_s26 = sshra.s32 %s1277_s20, 4  ;;  %s1833_s26 = int_to_ptr.hbm [resolvable:$true] %s1832_s26 }
  0x1c   : > { %1138 = vmatpush.bf16.msra.mxu2 %v1715_v8  ;;  %v1739_v27 = vld [vmem:[%s2359_s3 + $0x128] sm:$0xff]  ;;  %v1738_v32 = vld [vmem:[%s2359_s3 + $0x120] sm:$0xff]  ;;  %v1757_v33 = vld [vmem:[%s2359_s3 + $0x1b8] sm:$0xff]  ;;  %s1834_s28 = scalar_lea.hbm %s1833_s26, 16  ;;  %p1839_p0 = scmp.lt.s32.totalorder %s1833_s26, %s2362_s6 }
  0x1d   : > { %v1703_v30 = vld [vmem:[%s2359_s3 + $0x8] sm:$0xff]  ;;  %1206 = vmatpush.bf16.msrb.mxu0 %v1757_v33  ;;  %v1702_v35 = vld [vmem:[%s2359_s3] sm:$0xff]  ;;  %v1721_v36 = vld [vmem:[%s2359_s3 + $0x98] sm:$0xff]  ;;  %p1835_p11 = scmp.ne.s32.totalorder %s1833_s26, %s1834_s28  ;;  %p1840_p1 = scmp.lt.s32.totalorder %s1838_s10, %s1834_s28 }
  0x1e   : > { %1151 = vmatpush.bf16.msra.mxu3 %v1724_v21  ;;  %v1737_v37 = vld [vmem:[%s2359_s3 + $0x118] sm:$0xff]  ;;  %v1756_v40 = vld [vmem:[%s2359_s3 + $0x1b0] sm:$0xff]  ;;  %v1755_v45 = vld [vmem:[%s2359_s3 + $0x1a8] sm:$0xff] }
  0x1f   : > { %1124 = vmatpush.bf16.msra.mxu1 %v1707_v15  ;;  %v1733_v39 = vld [vmem:[%s2359_s3 + $0xf8] sm:$0xff]  ;;  %v1720_v42 = vld [vmem:[%s2359_s3 + $0x90] sm:$0xff]  ;;  %v1719_v47 = vld [vmem:[%s2359_s3 + $0x88] sm:$0xff]  ;;  %p1836_p12 = pnand %p1835_p11, %p1957_p5  ;;  %p1841_p2 = por %p1840_p1, %p1839_p0 }
  0x20   : > { %1139 = vmatpush.bf16.msra.mxu2 %v1714_v9  ;;  %v1736_v43 = vld [vmem:[%s2359_s3 + $0x110] sm:$0xff]  ;;  %v1735_v48 = vld [vmem:[%s2359_s3 + $0x108] sm:$0xff]  ;;  %v1754_v51 = vld [vmem:[%s2359_s3 + $0x1a0] sm:$0xff] }
  0x21   : > { %1207 = vmatpush.bf16.msrb.mxu0 %v1756_v40  ;;  %v1732_v44 = vld [vmem:[%s2359_s3 + $0xf0] sm:$0xff]  ;;  %v1731_v50 = vld [vmem:[%s2359_s3 + $0xe8] sm:$0xff]  ;;  %v1718_v53 = vld [vmem:[%s2359_s3 + $0x80] sm:$0xff]  ;;  %p1837_p13 = pneg %p1836_p12 }
  0x22   : > { %1152 = vmatpush.bf16.msra.mxu3 %v1723_v26  ;;  %v1734_v54 = vld [vmem:[%s2359_s3 + $0x100] sm:$0xff]  ;;  %v1749_v56 = vld [vmem:[%s2359_s3 + $0x178] sm:$0xff]  ;;  %v1748_v61 = vld [vmem:[%s2359_s3 + $0x170] sm:$0xff] }
  0x23   : > { %1125 = vmatpush.bf16.msra.mxu1 %v1706_v17  ;;  %v1730_v55 = vld [vmem:[%s2359_s3 + $0xe0] sm:$0xff]  ;;  %v1753_v57 = vld [vmem:[%s2359_s3 + $0x198] sm:$0xff]  ;;  %v1752_v62 = vld [vmem:[%s2359_s3 + $0x190] sm:$0xff]  ;;  %p1842_p3 = pnand %p1841_p2, %p1837_p13 }
  0x24   : > { %1140 = vmatpush.bf16.msra.mxu2 %v1713_v10  ;;  %v1729_v60 = vld [vmem:[%s2359_s3 + $0xd8] sm:$0xff]  ;;  %v1728_v0 = vld [vmem:[%s2359_s3 + $0xd0] sm:$0xff]  ;;  %v1747_v1 = vld [vmem:[%s2359_s3 + $0x168] sm:$0xff] }
  0x25   : > { %1208 = vmatpush.bf16.msrb.mxu0 %v1755_v45  ;;  %v1751_v2 = vld [vmem:[%s2359_s3 + $0x188] sm:$0xff]  ;;  %v1750_v8 = vld [vmem:[%s2359_s3 + $0x180] sm:$0xff]  ;;  %v1744_v17 = vld [vmem:[%s2359_s3 + $0x150] sm:$0xff] }
  0x26   : > { %1153 = vmatpush.bf16.msra.mxu3 %v1722_v31  ;;  %v1726_v11 = vld [vmem:[%s2359_s3 + $0xc0] sm:$0xff]  ;;  %v1743_v21 = vld [vmem:[%s2359_s3 + $0x148] sm:$0xff] }
  0x27   : > { %1126 = vmatpush.bf16.msra.mxu1 %v1705_v20 }
  0x28   : > { %1141 = vmatpush.bf16.msra.mxu2 %v1712_v12  ;;  %v1745_v12 = vld [vmem:[%s2359_s3 + $0x158] sm:$0xff] }
  0x29   : > { %1209 = vmatpush.bf16.msrb.mxu0 %v1754_v51 }
  0x2a   : > { %1154 = vmatpush.bf16.msra.mxu3 %v1721_v36 }
  0x2b   : > { %1398 = vmatmul.msk.bf16.gmra.mxu0 %vm312_vm0, %v1697_v3  ;;  %1127 = vmatpush.bf16.msra.mxu1 %v1704_v25  ;;  %v1727_v3 = vld [vmem:[%s2359_s3 + $0xc8] sm:$0xff] }
  0x2c   : > { %1142 = vmatpush.bf16.msra.mxu2 %v1711_v14  ;;  %v372_v14 = vshrl.u32 %v371_v7, 7 }
  0x2d   : > { %1210 = vmatpush.bf16.msrb.mxu0 %v1753_v57 }
  0x2e   : > { %1155 = vmatpush.bf16.msra.mxu3 %v1720_v42  ;;  %vm400_vm3 = vcmp.ge.s32.totalorder %v372_v14, 4  ;;  %v373_v40 = vadd.s32 8, %v372_v14 }
  0x2f   : > { %1128 = vmatpush.bf16.msra.mxu1 %v1703_v30 }
  0x30   : > { %1143 = vmatpush.bf16.msra.mxu2 %v1710_v16  ;;  %v385_v51 = vand.u32 3, %v373_v40 }
  0x31   : > { %1211 = vmatpush.bf16.msrb.mxu0 %v1752_v62 }
  0x32   : > { %1156 = vmatpush.bf16.msra.mxu3 %v1719_v47  ;;  %vm2248_vm8 = vcmp.ne.s32.totalorder %v385_v51, 0 }
  0x33   : > { %1129 = vmatpush.bf16.msra.mxu1 %v1702_v35  ;;  %v378_v35 = vand.u32 3, %v372_v14 }
  0x34   : > { %1178 = vmatpush.bf16.msrb.mxu2 %v1741_v19 }
  0x35   : > { %1212 = vmatpush.bf16.msrb.mxu0 %v1751_v2  ;;  %vm2218_vm5 = vcmp.ne.s32.totalorder %v378_v35, 0  ;;  %v1770_v2 = vld [vmem:[%s2359_s3 + $0x220] sm:$0xff]  ;;  %v1764_v35 = vld [vmem:[%s2359_s3 + $0x1f0] sm:$0xff] }
  0x36   : > { %1157 = vmatpush.bf16.msra.mxu3 %v1718_v53  ;;  %vm402_vm6 = vmand %vm400_vm3, %vm2218_vm5 }
  0x37   : > { %1164 = vmatpush.bf16.msrb.mxu1 %v1733_v39 }
  0x38   : > { %1179 = vmatpush.bf16.msrb.mxu2 %v1740_v22 }
  0x39   : > { %1213 = vmatpush.bf16.msrb.mxu0 %v1750_v8 }
  0x3a   : > { %1192 = vmatpush.bf16.msrb.mxu3 %v1749_v56 }
  0x3b   : > { %1399 = vmatmul.msk.bf16.gmra.mxu0 %vm312_vm0, %v1698_v5  ;;  %1165 = vmatpush.bf16.msrb.mxu1 %v1732_v44  ;;  %v1746_v5 = vld [vmem:[%s2359_s3 + $0x160] sm:$0xff] }
  0x3c   : > { %1180 = vmatpush.bf16.msrb.mxu2 %v1739_v27  ;;  %v1762_v44 = vld [vmem:[%s2359_s3 + $0x1e0] sm:$0xff] }
  0x3e   : > { %1193 = vmatpush.bf16.msrb.mxu3 %v1748_v61 }
  0x3f   : > { %1166 = vmatpush.bf16.msrb.mxu1 %v1731_v50 }
  0x40   : > { %1181 = vmatpush.bf16.msrb.mxu2 %v1738_v32 }
  0x42   : > { %1194 = vmatpush.bf16.msrb.mxu3 %v1747_v1 }
  0x43   : > { %1167 = vmatpush.bf16.msrb.mxu1 %v1730_v55 }
  0x44   : > { %1182 = vmatpush.bf16.msrb.mxu2 %v1737_v37 }
  0x46   : > { %1195 = vmatpush.bf16.msrb.mxu3 %v1746_v5 }
  0x47   : > { %1168 = vmatpush.bf16.msrb.mxu1 %v1729_v60 }
  0x48   : > { %1183 = vmatpush.bf16.msrb.mxu2 %v1736_v43  ;;  %v1772_v43 = vld [vmem:[%s2359_s3 + $0x230] sm:$0xff] }
  0x4a   : > { %1196 = vmatpush.bf16.msrb.mxu3 %v1745_v12 }
  0x4b   : > { %1400 = vmatmul.msk.bf16.gmra.mxu0 %vm312_vm0, %v1699_v6  ;;  %1169 = vmatpush.bf16.msrb.mxu1 %v1728_v0 }
  0x4c   : > { %1184 = vmatpush.bf16.msrb.mxu2 %v1735_v48 }
  0x4e   : > { %1197 = vmatpush.bf16.msrb.mxu3 %v1744_v17 }
  0x4f   : > { %1170 = vmatpush.bf16.msrb.mxu1 %v1727_v3 }
  0x50   : > { %1185 = vmatpush.bf16.msrb.mxu2 %v1734_v54  ;;  %v1771_v54 = vld [vmem:[%s2359_s3 + $0x228] sm:$0xff] }
  0x52   : > { %1198 = vmatpush.bf16.msrb.mxu3 %v1743_v21 }
  0x53   : > { %1171 = vmatpush.bf16.msrb.mxu1 %v1726_v11 }
  0x98   : > { %v334_v24 = vpop.f32.mrf.mxu0 }
  0x99   : > { %v335_v28 = vadd.f32 %v2035_v23, %v334_v24 }
  0x9b   : > { %v2053_v29 = vmax.f32 %v335_v28, 0.0  ;;  %v1742_v28 = vld [vmem:[%s2359_s3 + $0x140] sm:$0xff] }
  0x9c   : > { %1199 = vmatpush.bf16.msrb.mxu3 %v1742_v28 }
  0x9d   : > { %363 = vst.msk [vmem:[%s2051_s13] sm:$0xff] %vm362_vm1, %v2053_v29  ;;  %v469_v61 = vpack.c.bf16 %v2053_v29, %v2053_v29 }
  0xa0   : > { %v336_v34 = vpop.f32.mrf.mxu0 }
  0xa1   : > { %v337_v38 = vadd.f32 %v2035_v23, %v336_v34  ;;  %v1773_v34 = vld [vmem:[%s2359_s3 + $0x238] sm:$0xff] }
  0xa3   : > { %v2086_v41 = vmax.f32 %v337_v38, 0.0 }
  0xa5   : > { %364 = vst.msk [vmem:[%s2051_s13 + $0x8] sm:$0xff] %vm362_vm1, %v2086_v41  ;;  %v470_v57 = vpack.c.bf16 %v2086_v41, %v2086_v41 }
  0xa7   : > { %v515_v29 = vunpack.c.l.b16 %v470_v57  ;;  %v1760_v57 = vld [vmem:[%s2359_s3 + $0x1d0] sm:$0xff] }
  0xa8   : > { %v339_v46 = vpop.f32.mrf.mxu0 }
  0xa9   : > { %v340_v49 = vadd.f32 %v2035_v23, %v339_v46 }
  0xab   : > { %v2116_v52 = vmax.f32 %v340_v49, 0.0 }
  0xad   : > { %365 = vst.msk [vmem:[%s2051_s13 + $0x10] sm:$0xff] %vm362_vm1, %v2116_v52 }
  0xb0   : > { %v341_v58 = vpop.f32.mrf.mxu0 }
  0xb1   : > { %v342_v59 = vadd.f32 %v2035_v23, %v341_v58 }
  0xb3   : > { %v2146_v63 = vmax.f32 %v342_v59, 0.0 }
  0xb5   : > { %366 = vst.msk [vmem:[%s2051_s13 + $0x18] sm:$0xff] %vm362_vm1, %v2146_v63  ;;  %v430_v13 = vrot.slane %v2146_v63, 4  ;;  %v461_v14 = vrot.slane %v2146_v63, 7 }
  0xb8   : > { %v344_v4 = vpop.f32.mrf.mxu0 }
  0xb9   : > { %v345_v6 = vadd.f32 %v2035_v23, %v344_v4 }
  0xbb   : > { %v2170_v9 = vmax.f32 %v345_v6, 0.0 }
  0xbd   : > { %367 = vst.msk [vmem:[%s2051_s13 + $0x20] sm:$0xff] %vm362_vm1, %v2170_v9  ;;  %v431_v10 = vrot.slane %v2170_v9, 4 }
  0xbf   : > { %v432_v16 = vsel %vm429_vm2, %v430_v13, %v431_v10  ;;  %v514_v13 = vunpack.c.l.b16 %v469_v61 }
  0xc0   : > { %v346_v15 = vpop.f32.mrf.mxu0  ;;  %v437_v20 = vsel %vm400_vm3, %v432_v16, 0.0 }
  0xc1   : > { %v347_v18 = vadd.f32 %v2035_v23, %v346_v15  ;;  %v439_v24 = vpack.c.bf16 %v437_v20, %v437_v20 }
  0xc3   : > { %v2188_v19 = vmax.f32 %v347_v18, 0.0  ;;  %v496_v31 = vunpack.c.l.b16 %v439_v24  ;;  %v516_v24 = vpack.c.b16 %v515_v29, %v514_v13 }
  0xc5   : > { %368 = vst.msk [vmem:[%s2051_s13 + $0x28] sm:$0xff] %vm362_vm1, %v2188_v19  ;;  %v433_v22 = vrot.slane %v2188_v19, 4  ;;  %v412_v42 = vrot.slane %v2188_v19, 3  ;;  %v473_v45 = vrot.slane %v2188_v19, 7 }
  0xc7   : > { %v434_v25 = vsel %vm429_vm2, %v431_v10, %v433_v22 }
  0xc8   : > { %v349_v26 = vpop.f32.mrf.mxu0  ;;  %v440_v27 = vpack.c.bf16 %v434_v25, %v434_v25  ;;  %v1769_v25 = vld [vmem:[%s2359_s3 + $0x218] sm:$0xff] }
  0xc9   : > { %v350_v30 = vadd.f32 %v2035_v23, %v349_v26  ;;  %v1765_v26 = vld [vmem:[%s2359_s3 + $0x1f8] sm:$0xff] }
  0xca   : > { %v497_v32 = vunpack.c.l.b16 %v440_v27  ;;  %v459_v27 = vrot.slane %v2116_v52, 7 }
  0xcb   : > { %v2203_v33 = vmax.f32 %v350_v30, 0.0 }
  0xcc   : > { %v498_v36 = vpack.c.b16 %v497_v32, %v496_v31  ;;  %v458_v31 = vrot.slane %v2086_v41, 7  ;;  %v462_v32 = vsel %vm457_vm7, %v459_v27, %v461_v14  ;;  %v1767_v41 = vld [vmem:[%s2359_s3 + $0x208] sm:$0xff] }
  0xcd   : > { %369 = vst.msk [vmem:[%s2051_s13 + $0x30] sm:$0xff] %vm362_vm1, %v2203_v33  ;;  %v441_v37 = vrot.slane %v2203_v33, 4  ;;  %v413_v38 = vrot.slane %v2203_v33, 3  ;;  %v474_v39 = vrot.slane %v2203_v33, 7 }
  0xce   : > { %1144 = vmatmul.bf16.vlgmr.msra.gmra.mxu2 %v498_v36  ;;  %v460_v36 = vsel %vm457_vm7, %v458_v31, %v459_v27 }
  0xcf   : > { %1234 = vmatpush.bf16.msra.mxu2 %v1773_v34  ;;  %v442_v47 = vsel %vm429_vm2, %v433_v22, %v441_v37  ;;  %v414_v48 = vsel %vm411_vm4, %v412_v42, %v413_v38  ;;  %v475_v50 = vsel %vm457_vm7, %v473_v45, %v474_v39  ;;  %v1768_v34 = vld [vmem:[%s2359_s3 + $0x210] sm:$0xff]  ;;  %v465_v40 = vsel %vm2218_vm5, %v460_v36, 0.0 }
  0xd0   : > { %v351_v46 = vpop.f32.mrf.mxu0  ;;  %v447_v55 = vsel %vm400_vm3, %v442_v47, 0.0  ;;  %v419_v56 = vsel %vm402_vm6, %v414_v48, 0.0  ;;  %v480_v58 = vsel %vm2218_vm5, %v475_v50, 0.0  ;;  %v471_v45 = vpack.c.bf16 %v2116_v52, %v2116_v52 }
  0xd1   : > { %v352_v49 = vadd.f32 %v2035_v23, %v351_v46  ;;  %v449_v62 = vpack.c.bf16 %v447_v55, %v447_v55  ;;  %v421_v1 = vpack.c.bf16 %v419_v56, %v419_v56  ;;  %v482_v6 = vpack.c.bf16 %v480_v58, %v480_v58  ;;  %v1759_v58 = vld [vmem:[%s2359_s3 + $0x1c8] sm:$0xff] }
  0xd2   : > { %v486_v46 = vpack.c.bf16 %v2203_v33, %v2203_v33  ;;  %v467_v47 = vpack.c.bf16 %v465_v40, %v465_v40  ;;  %v520_v51 = vunpack.c.l.b16 %v471_v45 }
  0xd3   : > { %v2230_v53 = vmax.f32 %v352_v49, 0.0  ;;  %1235 = vmatpush.bf16.msra.mxu2 %v1772_v43  ;;  %v502_v15 = vunpack.c.l.b16 %v449_v62  ;;  %v490_v17 = vunpack.c.l.b16 %v421_v1  ;;  %v526_v20 = vunpack.c.l.b16 %v482_v6 }
  0xd4   : > { %v508_v52 = vunpack.c.l.b16 %v467_v47 }
  0xd5   : > { %370 = vst.msk [vmem:[%s2051_s13 + $0x38] sm:$0xff] %vm362_vm1, %v2230_v53  ;;  %v443_v23 = vrot.slane %v2230_v53, 4  ;;  %v415_v59 = vrot.slane %v2230_v53, 3  ;;  %v476_v60 = vrot.slane %v2230_v53, 7  ;;  %v487_v42 = vpack.c.bf16 %v2230_v53, %v2230_v53 }
  0xd6   : > { %v538_v53 = vunpack.c.l.b16 %v486_v46 }
  0xd7   : > { %1236 = vmatpush.bf16.msra.mxu2 %v1771_v54  ;;  %v444_v3 = vsel %vm429_vm2, %v441_v37, %v443_v23  ;;  %v416_v4 = vsel %vm411_vm4, %v413_v38, %v415_v59  ;;  %v477_v5 = vsel %vm457_vm7, %v474_v39, %v476_v60  ;;  %v466_v37 = vsel %vm2248_vm8, %v462_v32, 0.0  ;;  %v1763_v38 = vld [vmem:[%s2359_s3 + $0x1e8] sm:$0xff]  ;;  %v1761_v54 = vld [vmem:[%s2359_s3 + $0x1d8] sm:$0xff]  ;;  %v1758_v60 = vld [vmem:[%s2359_s3 + $0x1c0] sm:$0xff] }
  0xd8   : > { %v450_v7 = vpack.c.bf16 %v444_v3, %v444_v3  ;;  %v420_v8 = vsel %vm2248_vm8, %v416_v4, 0.0  ;;  %v481_v10 = vsel %vm2248_vm8, %v477_v5, 0.0  ;;  %v472_v39 = vpack.c.bf16 %v2146_v63, %v2146_v63  ;;  %v1766_v63 = vld [vmem:[%s2359_s3 + $0x200] sm:$0xff] }
  0xd9   : > { %v422_v11 = vpack.c.bf16 %v420_v8, %v420_v8  ;;  %v483_v12 = vpack.c.bf16 %v481_v10, %v481_v10  ;;  %v468_v43 = vpack.c.bf16 %v466_v37, %v466_v37  ;;  %v539_v49 = vunpack.c.l.b16 %v487_v42 }
  0xda   : > { %v503_v16 = vunpack.c.l.b16 %v450_v7  ;;  %v521_v48 = vunpack.c.l.b16 %v472_v39  ;;  %v485_v23 = vpack.c.bf16 %v2188_v19, %v2188_v19  ;;  %v484_v59 = vpack.c.bf16 %v2170_v9, %v2170_v9  ;;  %v1817_v19 = vld [vmem:[%s2360_s4] ss:$0 sm:$0xff] }
  0xdb   : > { %1237 = vmatpush.bf16.msra.mxu2 %v1770_v2  ;;  %v491_v18 = vunpack.c.l.b16 %v422_v11  ;;  %v527_v21 = vunpack.c.l.b16 %v483_v12  ;;  %v509_v50 = vunpack.c.l.b16 %v468_v43  ;;  %v540_v55 = vpack.c.b16 %v539_v49, %v538_v53 }
  0xdc   : > { %v504_v22 = vpack.c.b16 %v503_v16, %v502_v15  ;;  %v522_v33 = vpack.c.b16 %v521_v48, %v520_v51  ;;  %v533_v61 = vunpack.c.l.b16 %v485_v23  ;;  %v532_v62 = vunpack.c.l.b16 %v484_v59 }
  0xdd   : > { %v492_v28 = vpack.c.b16 %v491_v18, %v490_v17  ;;  %v528_v30 = vpack.c.b16 %v527_v21, %v526_v20  ;;  %v510_v56 = vpack.c.b16 %v509_v50, %v508_v52 }
  0xde   : > { %1158 = vmatmul.bf16.vlgmr.msra.gmra.mxu3 %v504_v22  ;;  %1186 = vmatmul.bf16.vlgmr.msrb.gmra.mxu2 %v516_v24  ;;  %v534_v0 = vpack.c.b16 %v533_v61, %v532_v62 }
  0xdf   : > { %1130 = vmatmul.bf16.vlgmr.msra.gmra.mxu1 %v492_v28  ;;  %1214 = vmatmul.bf16.vlgmr.msrb.gmra.mxu0 %v528_v30 }
  0xe0   : > { %1238 = vmatpush.bf16.msra.mxu2 %v1769_v25  ;;  %1220 = vmatpush.bf16.msra.mxu1 %v1765_v26 }
  0xe4   : > { %1239 = vmatpush.bf16.msra.mxu2 %v1768_v34  ;;  %1221 = vmatpush.bf16.msra.mxu1 %v1764_v35 }
  0xe8   : > { %1240 = vmatpush.bf16.msra.mxu2 %v1767_v41  ;;  %1222 = vmatpush.bf16.msra.mxu1 %v1763_v38 }
  0xec   : > { %1241 = vmatpush.bf16.msra.mxu2 %v1766_v63  ;;  %1223 = vmatpush.bf16.msra.mxu1 %v1762_v44 }
  0xee   : > { %1200 = vmatmul.bf16.vlgmr.msrb.gmra.mxu3 %v522_v33 }
  0xef   : > { %1242 = vmatmul.bf16.vlgmr.msra.gmra.mxu2 %v540_v55  ;;  %1172 = vmatmul.bf16.vlgmr.msrb.gmra.mxu1 %v510_v56 }
  0xf0   : > { %1224 = vmatpush.bf16.msra.mxu1 %v1761_v54 }
  0xf4   : > { %1225 = vmatpush.bf16.msra.mxu1 %v1760_v57 }
  0xf8   : > { %1226 = vmatpush.bf16.msra.mxu1 %v1759_v58 }
  0xfc   : > { %1227 = vmatpush.bf16.msra.mxu1 %v1758_v60 }
  0xff   : > { %1228 = vmatmul.bf16.vlgmr.msra.gmra.mxu1 %v534_v0 }
 0x151   : > { %v1145_v1 = vpop.f32.mrf.mxu2 }
 0x159   : > { %v1147_v3 = vpop.f32.mrf.mxu2 }
 0x15c   : > { %v1131_v2 = vpop.f32.mrf.mxu1  ;;  %v1215_v22 = vpop.f32.mrf.mxu0 }
 0x15d   : > { %v1132_v9 = vadd.f32 %v1817_v19, %v1131_v2 }
 0x15f   : > { %v1146_v7 = vadd.f32 %v1145_v1, %v1132_v9 }
 0x161   : > { %v1159_v4 = vpop.f32.mrf.mxu3  ;;  %v1187_v6 = vpop.f32.mrf.mxu2 }
 0x162   : > { %v1160_v10 = vadd.f32 %v1159_v4, %v1146_v7 }
 0x164   : > { %v1133_v5 = vpop.f32.mrf.mxu1  ;;  %v1217_v35 = vpop.f32.mrf.mxu0 }
 0x165   : > { %v1134_v11 = vadd.f32 %v1817_v19, %v1133_v5 }
 0x167   : > { %v1148_v13 = vadd.f32 %v1147_v3, %v1134_v11 }
 0x169   : > { %v1161_v29 = vpop.f32.mrf.mxu3  ;;  %v1189_v14 = vpop.f32.mrf.mxu2 }
 0x16a   : > { %v1162_v18 = vadd.f32 %v1161_v29, %v1148_v13 }
 0x16c   : > { %v1173_v8 = vpop.f32.mrf.mxu1 }
 0x16d   : > { %v1174_v12 = vadd.f32 %v1173_v8, %v1160_v10 }
 0x16f   : > { %v1188_v16 = vadd.f32 %v1187_v6, %v1174_v12 }
 0x171   : > { %v1201_v15 = vpop.f32.mrf.mxu3 }
 0x172   : > { %v1202_v20 = vadd.f32 %v1201_v15, %v1188_v16  ;;  %v1243_v24 = vpop.f32.mrf.mxu2 }
 0x174   : > { %v1175_v17 = vpop.f32.mrf.mxu1  ;;  %v1216_v26 = vadd.f32 %v1215_v22, %v1202_v20 }
 0x175   : > { %v1176_v21 = vadd.f32 %v1175_v17, %v1162_v18 }
 0x177   : > { %v1190_v25 = vadd.f32 %v1189_v14, %v1176_v21 }
 0x179   : > { %v1203_v27 = vpop.f32.mrf.mxu3 }
 0x17a   : > { %v1204_v31 = vadd.f32 %v1203_v27, %v1190_v25  ;;  %v1245_v38 = vpop.f32.mrf.mxu2 }
 0x17c   : > { %v1229_v28 = vpop.f32.mrf.mxu1  ;;  %v1218_v36 = vadd.f32 %v1217_v35, %v1204_v31 }
 0x17d   : > { %v1230_v30 = vadd.f32 %v1229_v28, %v1216_v26 }
 0x17f   : > { %v1244_v32 = vadd.f32 %v1243_v24, %v1230_v30 }
 0x181   : > { %v1248_v34 = vmax.f32 %v1244_v32, 0.0 }
 0x183   : > { %1251 = vst.msk [vmem:[%s252_s18] sm:$0xff] %vm1250_vm9, %v1248_v34 }
 0x184   : > { %v1231_v37 = vpop.f32.mrf.mxu1 }
 0x185   : > { %v1232_v41 = vadd.f32 %v1231_v37, %v1218_v36 }
 0x187   : > { %v1246_v39 = vadd.f32 %v1245_v38, %v1232_v41 }
 0x189   : > { %v1249_v40 = vmax.f32 %v1246_v39, 0.0 }
 0x18b   : > { %1252 = vst.msk [vmem:[%s252_s18 + $0x8] sm:$0xff] %vm1250_vm9, %v1249_v40 }
 0x18c   : > { %1845 = shalt.err (!%p1842_p3)
}
 0x18d   : > { %s1882_s11 = smov 128   ;;  %s1883_s15 = smov 8  }
 0x18e   : > { %1775 = dma.vmem_to_hbm [thread:$0]  (%p1957_p5), %s1275_s19, 256, %s1277_s20, %s1259_s25, %s1882_s11, %s1882_s11, %s1883_s15  }
 0x18f PF: > { %p1781_p4 = scmp.ge.s32.totalorder %s1880_s24, 2  ;;  %s1299_s16 = sand.u32 1, %s1868_s21  }
 0x190   : > { %s1300_s13 = scalar_lea.sflag [#allocation3], %s1299_s16 }
 0x191   : > { %p1778_p7 = pnand %p1781_p4, %p1961_p6 }
 0x193   : > { %p1779_p8 = pneg %p1778_p7 }
 0x195   : > { %1863 = dma.done.wait (%p1779_p8), %s1300_s13, 256  }
 0x196   : > { %1865 = vsyncadd (%p1779_p8), %s1300_s13, 4294967040  ;;  %p17_p9 = scmp.ge.s32.totalorder %s1944_s27, 4   ;;  %s2369_s21 = smov %s1872_s22 }
 0x197   : > { %s2370_s22 = smov %s1876_s23  ;;  %s2371_s23 = smov %s1955_s30 }
 0x198   : > { %s2372_s24 = smov %s1944_s27  ;;  %19 = sbr.rel (!%p17_p9) target bundleno = 3 (0x3), region = 87 }
 0x19d   :  { %1306 = vsyncpa [#allocation3], 1 }
 0x19e   :  { %1308 = vsyncpa [#allocation3 + $0x1], 1 }

</bundles_post_ra>
